<compile_context>
chip_gen: v7x
topology: tpu7x:2x2x1
jax: 0.10.0
libtpu: 0.0.40
codegen_flags: <defaults>
</compile_context>

<pallas_src>
import jax
import jax.numpy as jnp
from jax.experimental import pallas as pl
from jax.experimental.pallas import tpu as pltpu

EPS = 1e-9          # kept for parity with the PyTorch spec (kernel uses the stable logits form)
NUM_DIGITS = 10
NUM_HIDDEN = 256
NUM_PIXELS = 784
NUM_STYLE = 50


def _round_up(x, m):
    return (x + m - 1) // m * m


def decoder_kernel(d_ref, s_ref, w1d_ref, w1s_ref, b1_ref, w2_ref, b2_ref, x_ref,
                   mean_ref, loss_ref):
    # d_ref: (TB, 10) bf16   s_ref: (TB, 50) bf16
    # w1d_ref: (10, 256) bf16, w1s_ref: (50, 256) bf16, b1_ref: (1, 256) f32
    # w2_ref: (256, 784) bf16, b2_ref: (1, 784) f32
    # x_ref:  (TB, 784) bf16 target images
    # mean_ref: (TB, 784) bf16, loss_ref: (TB, 1) f32

    # Layer 1: digits @ W1_d + styles @ W1_s + b1  (no wrapper-side concat needed).
    h = (jnp.dot(d_ref[...], w1d_ref[...], preferred_element_type=jnp.float32)
         + jnp.dot(s_ref[...], w1s_ref[...], preferred_element_type=jnp.float32)
         + b1_ref[...])
    h = jnp.maximum(h, 0.0)                                           # ReLU (VPU)

    # Layer 2 on the MXU with bf16 operands / f32 accumulation.
    logits = (jnp.dot(h.astype(jnp.bfloat16), w2_ref[...],
                      preferred_element_type=jnp.float32) + b2_ref[...])

    # One shared exp(-|l|) pass feeds both sigmoid and the softplus-form BCE.
    e = jnp.exp(-jnp.abs(logits))                                     # EUP exp
    inv = pl.reciprocal(1.0 + e, approx=True)                         # EUP vrcp (cheap slot)
    x_hat = jnp.where(logits >= 0.0, inv, e * inv)                    # sigmoid(logits), VPU select
    mean_ref[...] = x_hat.astype(mean_ref.dtype)

    # Stable BCE straight from logits:
    #   softplus(l) - x*l == -( x*log(sigmoid(l)) + (1-x)*log(1-sigmoid(l)) )
    x = x_ref[...].astype(jnp.float32)
    softplus = jnp.maximum(logits, 0.0) + jnp.log(1.0 + e)            # EUP log
    bce = softplus - x * logits
    loss_ref[...] = jnp.sum(bce, axis=-1, keepdims=True)              # reduce over pixels (XLU)


def decoder_forward(digits, styles, images, params, *, tb=512):
    """digits: (..., 10), styles: (..., 50), images: (..., 784).
    Returns (images_mean (..., 784) bf16, loss (...,) f32)."""
    w1d, w1s, b1, w2, b2 = params
    lead = digits.shape[:-1]
    B = 1
    for d_ in lead:
        B *= d_

    d = digits.reshape(B, NUM_DIGITS).astype(jnp.bfloat16)
    s = styles.reshape(B, NUM_STYLE).astype(jnp.bfloat16)
    x = images.reshape(B, NUM_PIXELS).astype(jnp.bfloat16)

    # Row tiling: TB=512 amortizes per-grid-step overhead (~0.35 us/step) while keeping the
    # double-buffered x/mean tiles (~3.3 MiB) well inside scoped VMEM on v5e/v6e (128 MiB phys)
    # and v7x (64 MiB phys).  Small batches collapse to one tile.
    tb_eff = min(tb, _round_up(B, 8))
    Bp = _round_up(B, tb_eff)
    if Bp != B:
        pad = Bp - B
        d = jnp.pad(d, ((0, pad), (0, 0)))
        s = jnp.pad(s, ((0, pad), (0, 0)))
        x = jnp.pad(x, ((0, pad), (0, 0)))

    w1d_b = w1d.astype(jnp.bfloat16)
    w1s_b = w1s.astype(jnp.bfloat16)
    w2_b = w2.astype(jnp.bfloat16)

    DIN_D, DIN_S, H, P = NUM_DIGITS, NUM_STYLE, NUM_HIDDEN, NUM_PIXELS

    grid_spec = pl.GridSpec(
        grid=(Bp // tb_eff,),
        in_specs=[
            pl.BlockSpec((tb_eff, DIN_D), lambda i: (i, 0)),   # digits tile
            pl.BlockSpec((tb_eff, DIN_S), lambda i: (i, 0)),   # styles tile
            pl.BlockSpec((DIN_D, H), lambda i: (0, 0)),        # weights: constant block
            pl.BlockSpec((DIN_S, H), lambda i: (0, 0)),        #   index -> VMEM-resident
            pl.BlockSpec((1, H), lambda i: (0, 0)),
            pl.BlockSpec((H, P), lambda i: (0, 0)),
            pl.BlockSpec((1, P), lambda i: (0, 0)),
            pl.BlockSpec((tb_eff, P), lambda i: (i, 0)),       # images tile
        ],
        out_specs=[
            pl.BlockSpec((tb_eff, P), lambda i: (i, 0)),       # images_mean tile
            pl.BlockSpec((tb_eff, 1), lambda i: (i, 0)),       # per-row loss
        ],
    )

    images_mean, loss = pl.pallas_call(
        decoder_kernel,
        grid_spec=grid_spec,
        out_shape=(
            jax.ShapeDtypeStruct((Bp, P), jnp.bfloat16),
            jax.ShapeDtypeStruct((Bp, 1), jnp.float32),
        ),
        compiler_params=pltpu.CompilerParams(
            dimension_semantics=("parallel",),          # batch tiles shard across TCs on v7x
            vmem_limit_bytes=48 * 1024 * 1024,
        ),
    )(d, s, w1d_b, w1s_b, b1, w2_b, b2, x)

    images_mean = images_mean[:B].reshape(*lead, P)
    loss = loss[:B, 0].reshape(*lead)
    return images_mean, loss


def init_params(key):
    """Deterministic init matching PyTorch nn.Linear default U(-1/sqrt(fan_in), 1/sqrt(fan_in)).
    Weights stored as (in, out); the first-layer weight is split into digit/style halves."""
    k1, k2, k3, k4 = jax.random.split(key, 4)
    din = NUM_STYLE + NUM_DIGITS
    lim1 = 1.0 / jnp.sqrt(jnp.float32(din))
    lim2 = 1.0 / jnp.sqrt(jnp.float32(NUM_HIDDEN))
    w1 = jax.random.uniform(k1, (din, NUM_HIDDEN), jnp.float32, -lim1, lim1)
    b1 = jax.random.uniform(k2, (1, NUM_HIDDEN), jnp.float32, -lim1, lim1)
    w2 = jax.random.uniform(k3, (NUM_HIDDEN, NUM_PIXELS), jnp.float32, -lim2, lim2)
    b2 = jax.random.uniform(k4, (1, NUM_PIXELS), jnp.float32, -lim2, lim2)
    w1d, w1s = w1[:NUM_DIGITS], w1[NUM_DIGITS:]
    return w1d, w1s, b1, w2, b2


def reference_forward(digits, styles, images, params):
    """Pure-JAX reference mirroring the kernel's precision choices
    (bf16 matmul operands / bf16 images, f32 accumulation, logits-form BCE)."""
    w1d, w1s, b1, w2, b2 = params
    d = digits.astype(jnp.bfloat16)
    s = styles.astype(jnp.bfloat16)
    h = (jnp.dot(d, w1d.astype(jnp.bfloat16), preferred_element_type=jnp.float32)
         + jnp.dot(s, w1s.astype(jnp.bfloat16), preferred_element_type=jnp.float32)
         + b1[0])
    h = jnp.maximum(h, 0.0)
    logits = jnp.dot(h.astype(jnp.bfloat16), w2.astype(jnp.bfloat16),
                     preferred_element_type=jnp.float32) + b2[0]
    x_hat = jax.nn.sigmoid(logits)
    x = images.astype(jnp.bfloat16).astype(jnp.float32)
    softplus = jnp.maximum(logits, 0.0) + jnp.log1p(jnp.exp(-jnp.abs(logits)))
    loss = (softplus - x * logits).sum(-1)
    return x_hat, loss


if __name__ == "__main__":
    key = jax.random.PRNGKey(0)
    kp, kd, ks, kx = jax.random.split(key, 4)

    params = init_params(kp)

    # IWAE-style shapes: (num_samples, batch, feature)
    num_samples, batch = 2, 4
    # relaxed one-hot 'digits' samples from q (Concrete): softmax over gumbel-ish logits
    digits = jax.nn.softmax(
        jax.random.normal(kd, (num_samples, batch, NUM_DIGITS), jnp.float32) / 0.66, axis=-1)
    # 'styles' samples from q (Normal)
    styles = jax.random.normal(ks, (num_samples, batch, NUM_STYLE), jnp.float32)
    # binarized MNIST-like images in [0, 1]
    images = jax.random.uniform(kx, (num_samples, batch, NUM_PIXELS), jnp.float32)

    images_mean, loss = decoder_forward(digits, styles, images, params)
    jax.block_until_ready((images_mean, loss))

    # verify against pure-JAX reference (same bf16/f32 precision policy as the kernel)
    ref_mean, ref_loss = reference_forward(digits, styles, images, params)
    assert images_mean.shape == (num_samples, batch, NUM_PIXELS)
    assert loss.shape == (num_samples, batch)
    assert jnp.allclose(images_mean.astype(jnp.float32), ref_mean, atol=1e-2, rtol=1e-2)
    assert jnp.allclose(loss, ref_loss, atol=5e-2, rtol=5e-4)

    print("KERNEL_OK")
</pallas_src>

<mosaic_0001>
module attributes {stable_mosaic.version = 11 : i64} {
  func.func @decoder_kernel(%arg0: i32, %arg1: memref<8x10xbf16, #tpu.memory_space<vmem>>, %arg2: memref<8x50xbf16, #tpu.memory_space<vmem>>, %arg3: memref<10x256xbf16, #tpu.memory_space<vmem>>, %arg4: memref<50x256xbf16, #tpu.memory_space<vmem>>, %arg5: memref<1x256xf32, #tpu.memory_space<vmem>>, %arg6: memref<256x784xbf16, #tpu.memory_space<vmem>>, %arg7: memref<1x784xf32, #tpu.memory_space<vmem>>, %arg8: memref<8x784xbf16, #tpu.memory_space<vmem>>, %arg9: memref<8x784xbf16, #tpu.memory_space<vmem>>, %arg10: memref<8x1xf32, #tpu.memory_space<vmem>>) attributes {dimension_semantics = [#tpu.dimension_semantics<parallel>], iteration_bounds = array<i64: 1>, scalar_prefetch = 0 : i64, scratch_operands = 0 : i64, tpu.core_type = #tpu.core_type<tc>, window_params = [{transform_indices = @transform_0, window_bounds = array<i64: 8, 10>}, {transform_indices = @transform_1, window_bounds = array<i64: 8, 50>}, {pipeline_mode = #tpu.pipeline_mode<synchronous>, transform_indices = @transform_2, window_bounds = array<i64: 10, 256>}, {pipeline_mode = #tpu.pipeline_mode<synchronous>, transform_indices = @transform_3, window_bounds = array<i64: 50, 256>}, {pipeline_mode = #tpu.pipeline_mode<synchronous>, transform_indices = @transform_4, window_bounds = array<i64: 1, 256>}, {pipeline_mode = #tpu.pipeline_mode<synchronous>, transform_indices = @transform_5, window_bounds = array<i64: 256, 784>}, {pipeline_mode = #tpu.pipeline_mode<synchronous>, transform_indices = @transform_6, window_bounds = array<i64: 1, 784>}, {transform_indices = @transform_7, window_bounds = array<i64: 8, 784>}, {transform_indices = @transform_8, window_bounds = array<i64: 8, 784>}, {transform_indices = @transform_9, window_bounds = array<i64: 8, 1>}]} {
    %c0 = arith.constant 0 : index
    %c0_0 = arith.constant 0 : index
    %0 = vector.load %arg1[%c0, %c0_0] : memref<8x10xbf16, #tpu.memory_space<vmem>>, vector<8x10xbf16>
    %c0_1 = arith.constant 0 : index
    %c0_2 = arith.constant 0 : index
    %1 = vector.load %arg3[%c0_1, %c0_2] : memref<10x256xbf16, #tpu.memory_space<vmem>>, vector<10x256xbf16>
    %cst = arith.constant dense<0.000000e+00> : vector<8x256xf32>
    %2 = tpu.matmul %0, %1, %cst {dimension_numbers = #tpu.dot_dimension_numbers<[1], [0], [0], [1], [0, 0, 1, 1], [], []>} : vector<8x10xbf16>, vector<10x256xbf16>, vector<8x256xf32> -> vector<8x256xf32>
    %c0_3 = arith.constant 0 : index
    %c0_4 = arith.constant 0 : index
    %3 = vector.load %arg2[%c0_3, %c0_4] : memref<8x50xbf16, #tpu.memory_space<vmem>>, vector<8x50xbf16>
    %c0_5 = arith.constant 0 : index
    %c0_6 = arith.constant 0 : index
    %4 = vector.load %arg4[%c0_5, %c0_6] : memref<50x256xbf16, #tpu.memory_space<vmem>>, vector<50x256xbf16>
    %cst_7 = arith.constant dense<0.000000e+00> : vector<8x256xf32>
    %5 = tpu.matmul %3, %4, %cst_7 {dimension_numbers = #tpu.dot_dimension_numbers<[1], [0], [0], [1], [0, 0, 1, 1], [], []>} : vector<8x50xbf16>, vector<50x256xbf16>, vector<8x256xf32> -> vector<8x256xf32>
    %6 = arith.addf %2, %5 : vector<8x256xf32>
    %c0_8 = arith.constant 0 : index
    %c0_9 = arith.constant 0 : index
    %7 = vector.load %arg5[%c0_8, %c0_9] : memref<1x256xf32, #tpu.memory_space<vmem>>, vector<1x256xf32>
    %8 = vector.broadcast %7 : vector<1x256xf32> to vector<8x256xf32>
    %9 = arith.addf %6, %8 : vector<8x256xf32>
    %cst_10 = arith.constant 0.000000e+00 : f32
    %10 = vector.broadcast %cst_10 : f32 to vector<8x256xf32>
    %11 = arith.maximumf %9, %10 : vector<8x256xf32>
    %12 = arith.truncf %11 : vector<8x256xf32> to vector<8x256xbf16>
    %c0_11 = arith.constant 0 : index
    %c0_12 = arith.constant 0 : index
    %13 = vector.load %arg6[%c0_11, %c0_12] : memref<256x784xbf16, #tpu.memory_space<vmem>>, vector<256x784xbf16>
    %cst_13 = arith.constant dense<0.000000e+00> : vector<8x784xf32>
    %14 = tpu.matmul %12, %13, %cst_13 {dimension_numbers = #tpu.dot_dimension_numbers<[1], [0], [0], [1], [0, 0, 1, 1], [], []>} : vector<8x256xbf16>, vector<256x784xbf16>, vector<8x784xf32> -> vector<8x784xf32>
    %c0_14 = arith.constant 0 : index
    %c0_15 = arith.constant 0 : index
    %15 = vector.load %arg7[%c0_14, %c0_15] : memref<1x784xf32, #tpu.memory_space<vmem>>, vector<1x784xf32>
    %16 = vector.broadcast %15 : vector<1x784xf32> to vector<8x784xf32>
    %17 = arith.addf %14, %16 : vector<8x784xf32>
    %18 = math.absf %17 : vector<8x784xf32>
    %cst_16 = arith.constant 0.000000e+00 : f32
    %19 = vector.broadcast %cst_16 : f32 to vector<8x784xf32>
    %20 = arith.subf %19, %18 : vector<8x784xf32>
    %21 = math.exp %20 : vector<8x784xf32>
    %cst_17 = arith.constant 1.000000e+00 : f32
    %22 = vector.broadcast %cst_17 : f32 to vector<8x784xf32>
    %23 = arith.addf %22, %21 : vector<8x784xf32>
    %24 = tpu.reciprocal %23 {approx = true} : vector<8x784xf32> -> vector<8x784xf32>
    %cst_18 = arith.constant 0.000000e+00 : f32
    %25 = vector.broadcast %cst_18 : f32 to vector<8x784xf32>
    %26 = arith.cmpf oge, %17, %25 : vector<8x784xf32>
    %27 = arith.mulf %21, %24 : vector<8x784xf32>
    %28 = arith.select %26, %24, %27 : vector<8x784xi1>, vector<8x784xf32>
    %29 = arith.truncf %28 : vector<8x784xf32> to vector<8x784xbf16>
    %c0_19 = arith.constant 0 : index
    %c0_20 = arith.constant 0 : index
    %30 = vector.load %arg9[%c0_19, %c0_20] : memref<8x784xbf16, #tpu.memory_space<vmem>>, vector<8x784xbf16>
    tpu.vector_store %arg9[%c0_19, %c0_20], %29 {strides = array<i32>} : memref<8x784xbf16, #tpu.memory_space<vmem>>, vector<8x784xbf16>,
    %c0_21 = arith.constant 0 : index
    %c0_22 = arith.constant 0 : index
    %31 = vector.load %arg8[%c0_21, %c0_22] : memref<8x784xbf16, #tpu.memory_space<vmem>>, vector<8x784xbf16>
    %32 = arith.extf %31 : vector<8x784xbf16> to vector<8x784xf32>
    %cst_23 = arith.constant 0.000000e+00 : f32
    %33 = vector.broadcast %cst_23 : f32 to vector<8x784xf32>
    %34 = arith.maximumf %17, %33 : vector<8x784xf32>
    %cst_24 = arith.constant 1.000000e+00 : f32
    %35 = vector.broadcast %cst_24 : f32 to vector<8x784xf32>
    %36 = arith.addf %35, %21 : vector<8x784xf32>
    %37 = math.log %36 : vector<8x784xf32>
    %38 = arith.addf %34, %37 : vector<8x784xf32>
    %39 = arith.mulf %32, %17 : vector<8x784xf32>
    %40 = arith.subf %38, %39 : vector<8x784xf32>
    %cst_25 = arith.constant dense<0.000000e+00> : vector<8xf32>
    %41 = vector.multi_reduction <add>, %40, %cst_25 [1] : vector<8x784xf32> to vector<8xf32>
    %42 = vector.shape_cast %41 : vector<8xf32> to vector<8x1xf32>
    %c0_26 = arith.constant 0 : index
    %c0_27 = arith.constant 0 : index
    %43 = vector.load %arg10[%c0_26, %c0_27] : memref<8x1xf32, #tpu.memory_space<vmem>>, vector<8x1xf32>
    tpu.vector_store %arg10[%c0_26, %c0_27], %42 {strides = array<i32>} : memref<8x1xf32, #tpu.memory_space<vmem>>, vector<8x1xf32>,
    return
  }
  func.func @transform_0(%arg0: i32) -> (i32, i32) {
    %c0_i32 = arith.constant 0 : i32
    %c0_i32_0 = arith.constant 0 : i32
    return %arg0, %c0_i32 : i32, i32
  }
  func.func @transform_1(%arg0: i32) -> (i32, i32) {
    %c0_i32 = arith.constant 0 : i32
    %c0_i32_0 = arith.constant 0 : i32
    return %arg0, %c0_i32 : i32, i32
  }
  func.func @transform_2(%arg0: i32) -> (i32, i32) {
    %c0_i32 = arith.constant 0 : i32
    %c0_i32_0 = arith.constant 0 : i32
    %c0_i32_1 = arith.constant 0 : i32
    return %c0_i32, %c0_i32_0 : i32, i32
  }
  func.func @transform_3(%arg0: i32) -> (i32, i32) {
    %c0_i32 = arith.constant 0 : i32
    %c0_i32_0 = arith.constant 0 : i32
    %c0_i32_1 = arith.constant 0 : i32
    return %c0_i32, %c0_i32_0 : i32, i32
  }
  func.func @transform_4(%arg0: i32) -> (i32, i32) {
    %c0_i32 = arith.constant 0 : i32
    %c0_i32_0 = arith.constant 0 : i32
    %c0_i32_1 = arith.constant 0 : i32
    return %c0_i32, %c0_i32_0 : i32, i32
  }
  func.func @transform_5(%arg0: i32) -> (i32, i32) {
    %c0_i32 = arith.constant 0 : i32
    %c0_i32_0 = arith.constant 0 : i32
    %c0_i32_1 = arith.constant 0 : i32
    return %c0_i32, %c0_i32_0 : i32, i32
  }
  func.func @transform_6(%arg0: i32) -> (i32, i32) {
    %c0_i32 = arith.constant 0 : i32
    %c0_i32_0 = arith.constant 0 : i32
    %c0_i32_1 = arith.constant 0 : i32
    return %c0_i32, %c0_i32_0 : i32, i32
  }
  func.func @transform_7(%arg0: i32) -> (i32, i32) {
    %c0_i32 = arith.constant 0 : i32
    %c0_i32_0 = arith.constant 0 : i32
    return %arg0, %c0_i32 : i32, i32
  }
  func.func @transform_8(%arg0: i32) -> (i32, i32) {
    %c0_i32 = arith.constant 0 : i32
    %c0_i32_0 = arith.constant 0 : i32
    return %arg0, %c0_i32 : i32, i32
  }
  func.func @transform_9(%arg0: i32) -> (i32, i32) {
    %c0_i32 = arith.constant 0 : i32
    %c0_i32_0 = arith.constant 0 : i32
    return %arg0, %c0_i32 : i32, i32
  }
}

</mosaic_0001>

<bundles_post_ra>
// kernel: tpu_custom_call.1
= control target key start
LH: loop header
LB: loop body
LE: loop exit
PB: predicated region body
PF: predicated region fallthrough
CT: control target
= control target key end

     0   :  { %v1691_v2 = vmov 0   ;;  %vm83_vm0 = vcmask 1040384   ;;  %vm143_vm1 = vcmask 1044480   ;;  %vm79_vm2 = vcmask 408576   ;;  %s2218_s0 = inlined_call_operand.vmem [shape: bf16[8,10], index: 0, kind: input, shape index: {}]   ;;  %s2219_s1 = inlined_call_operand.vmem [shape: bf16[8,50], index: 1, kind: input, shape index: {}]   ;;  %s2220_s2 = inlined_call_operand.vmem [shape: bf16[10,256], index: 2, kind: input, shape index: {}]   ;;  %s2221_s3 = inlined_call_operand.vmem [shape: bf16[50,256], index: 3, kind: input, shape index: {}]   ;;  %s2222_s4 = inlined_call_operand.vmem [shape: f32[1,256], index: 4, kind: input, shape index: {}]   ;;  %s2223_s5 = inlined_call_operand.vmem [shape: bf16[256,784], index: 5, kind: input, shape index: {}]   ;;  %s2224_s6 = inlined_call_operand.vmem [shape: f32[1,784], index: 6, kind: input, shape index: {}]   ;;  %s2225_s7 = inlined_call_operand.vmem [shape: bf16[8,784], index: 7, kind: input, shape index: {}]   ;;  %s2226_s8 = inlined_call_operand.hbm [shape: bf16[8,784], index: 8, kind: output, shape index: {0}]   ;;  %s2227_s9 = inlined_call_operand.vmem [shape: f32[8,1], index: 9, kind: output, shape index: {1}]  }
   0x1   :  { %v1451_v0 = vld [vmem:[%s2221_s3 + $0x4] ss:$8 sps:$4 sm:$0xff]   ;;  %v1453_v1 = vld [vmem:[%s2221_s3] ss:$8 sps:$4 sm:$0xff]   ;;  %122 = vmatprep.mubr.bf16.mxu0 %v1691_v2  ;;  %v1454_v3 = vld [vmem:[%s2221_s3 + $0x14] ss:$8 sps:$4 sm:$0xff]  }
   0x2   :  { %90 = vmatprep.subr.bf16.mxu0 %v1451_v0  ;;  %v1456_v4 = vld [vmem:[%s2221_s3 + $0x10] ss:$8 sps:$4 sm:$0xff]   ;;  %v1457_v5 = vld [vmem:[%s2221_s3 + $0x24] ss:$8 sps:$4 sm:$0xff]   ;;  %v1459_v7 = vld [vmem:[%s2221_s3 + $0x20] ss:$8 sps:$4 sm:$0xff]  }
   0x3   :  { %91 = vmatpush1.bf16.msra.mxu0 %v1453_v1  ;;  %v43_v6 = vld [vmem:[%s2221_s3 + $0x30] sm:$0x11]  ;;  %v1465_v8 = vld [vmem:[%s2223_s5 + $0x4] ss:$28 sps:$4 sm:$0xff]   ;;  %v1471_v12 = vld [vmem:[%s2223_s5 + $0x3c] ss:$28 sps:$4 sm:$0xff]  }
   0x4   :  { %92 = vmatprep.subr.bf16.mxu0 %v1454_v3  ;;  %v1300_v9 = vcombine.high %v43_v6, %v43_v6  ;;  %v1299_v10 = vcombine.low %v43_v6, %v43_v6  ;;  %950 = vmatprep.subr.bf16.mxu1 %v1465_v8  ;;  %v1470_v11 = vld [vmem:[%s2223_s5] ss:$28 sps:$4 sm:$0xff]   ;;  %v1462_v13 = vld [vmem:[%s2220_s2 + $0x4] ss:$8 sps:$4 sm:$0x1f]   ;;  %vm139_vm3 = vcmask 80896  }
   0x5   :  { %v1464_v14 = vld [vmem:[%s2220_s2] ss:$8 sps:$4 sm:$0x1f]   ;;  %951 = vmatpush1.bf16.msra.mxu1 %v1470_v11  ;;  %v1476_v15 = vld [vmem:[%s2223_s5 + $0x38] ss:$28 sps:$4 sm:$0xff]  }
   0x6   :  { %v85_v16 = vsel %vm83_vm0, %v1299_v10, 0  ;;  %952 = vmatprep.subr.bf16.mxu1 %v1471_v12  ;;  %v1477_v17 = vld [vmem:[%s2223_s5 + $0x74] ss:$28 sps:$4 sm:$0xff]   ;;  %v36_v18 = vld [vmem:[%s2219_s1] sm:$0xf]  ;;  %v145_v19 = vsel %vm143_vm1, %v1464_v14, 0 }
   0x7   :  { %93 = vmatpush1.bf16.msra.mxu0 %v1456_v4  ;;  %v1469_v20 = vld [vmem:[%s2223_s5 + $0xc] ss:$28 sps:$4 sm:$0xff]   ;;  %v1489_v24 = vld [vmem:[%s2223_s5 + $0xe4] ss:$28 sps:$4 sm:$0xff]   ;;  %v1495_v29 = vld [vmem:[%s2223_s5 + $0x11c] ss:$28 sps:$4 sm:$0xff]  }
   0x8   :  { %94 = vmatprep.subr.bf16.mxu0 %v1457_v5  ;;  %v1482_v21 = vld [vmem:[%s2223_s5 + $0x70] ss:$28 sps:$4 sm:$0xff]   ;;  %v1488_v23 = vld [vmem:[%s2223_s5 + $0xa8] ss:$28 sps:$4 sm:$0xff]   ;;  %v33_v25 = vld [vmem:[%s2218_s0] sm:$0xf] }
   0x9   :  { %953 = vmatpush1.bf16.msra.mxu1 %v1476_v15  ;;  %v1483_v22 = vld [vmem:[%s2223_s5 + $0xac] ss:$28 sps:$4 sm:$0xff]   ;;  %v1475_v27 = vld [vmem:[%s2223_s5 + $0x44] ss:$28 sps:$4 sm:$0xff]   ;;  %v1481_v31 = vld [vmem:[%s2223_s5 + $0x7c] ss:$28 sps:$4 sm:$0xff]  }
   0xa   :  { %954 = vmatprep.subr.bf16.mxu1 %v1477_v17  ;;  %v1467_v26 = vld [vmem:[%s2223_s5 + $0x8] ss:$28 sps:$4 sm:$0xff]   ;;  %v1494_v28 = vld [vmem:[%s2223_s5 + $0xe0] ss:$28 sps:$4 sm:$0xff]   ;;  %v1500_v32 = vld [vmem:[%s2223_s5 + $0x118] ss:$28 sps:$4 sm:$0xff]  }
   0xb   :  { %95 = vmatpush1.bf16.msra.mxu0 %v1459_v7  ;;  %v1473_v30 = vld [vmem:[%s2223_s5 + $0x40] ss:$28 sps:$4 sm:$0xff]   ;;  %v1501_v33 = vld [vmem:[%s2223_s5 + $0x154] ss:$28 sps:$4 sm:$0xff]   ;;  %v1507_v37 = vld [vmem:[%s2223_s5 + $0x18c] ss:$28 sps:$4 sm:$0xff]  }
   0xc   :  { %1301 = vmatprep.subr.msk.bf16.mxu0 %vm83_vm0, %v1300_v9  ;;  %v1479_v34 = vld [vmem:[%s2223_s5 + $0x78] ss:$28 sps:$4 sm:$0xff]   ;;  %v1506_v36 = vld [vmem:[%s2223_s5 + $0x150] ss:$28 sps:$4 sm:$0xff]   ;;  %v1512_v40 = vld [vmem:[%s2223_s5 + $0x188] ss:$28 sps:$4 sm:$0xff]  }
   0xd   :  { %955 = vmatpush1.bf16.msra.mxu1 %v1482_v21  ;;  %v1487_v35 = vld [vmem:[%s2223_s5 + $0xb4] ss:$28 sps:$4 sm:$0xff]   ;;  %v1493_v39 = vld [vmem:[%s2223_s5 + $0xec] ss:$28 sps:$4 sm:$0xff]   ;;  %v1513_v42 = vld [vmem:[%s2223_s5 + $0x1c4] ss:$28 sps:$4 sm:$0xff]  }
   0xe   :  { %956 = vmatprep.subr.bf16.mxu1 %v1483_v22  ;;  %v1485_v38 = vld [vmem:[%s2223_s5 + $0xb0] ss:$28 sps:$4 sm:$0xff]   ;;  %v1491_v41 = vld [vmem:[%s2223_s5 + $0xe8] ss:$28 sps:$4 sm:$0xff]   ;;  %v1518_v44 = vld [vmem:[%s2223_s5 + $0x1c0] ss:$28 sps:$4 sm:$0xff]  }
   0xf   :  { %97 = vmatpush1.bf16.msra.mxu0 %v85_v16  ;;  %v1499_v43 = vld [vmem:[%s2223_s5 + $0x124] ss:$28 sps:$4 sm:$0xff]   ;;  %v1519_v45 = vld [vmem:[%s2223_s5 + $0x1fc] ss:$28 sps:$4 sm:$0xff]   ;;  %v1525_v49 = vld [vmem:[%s2223_s5 + $0x234] ss:$28 sps:$4 sm:$0xff]  }
  0x10   :  { %1305 = vmatprep.subr.msk.bf16.mxu0 %vm143_vm1, %v1462_v13  ;;  %v1497_v46 = vld [vmem:[%s2223_s5 + $0x120] ss:$28 sps:$4 sm:$0xff]   ;;  %v1524_v48 = vld [vmem:[%s2223_s5 + $0x1f8] ss:$28 sps:$4 sm:$0xff]   ;;  %v1530_v52 = vld [vmem:[%s2223_s5 + $0x230] ss:$28 sps:$4 sm:$0xff]  }
  0x11   :  { %957 = vmatpush1.bf16.msra.mxu1 %v1488_v23  ;;  %v1505_v47 = vld [vmem:[%s2223_s5 + $0x15c] ss:$28 sps:$4 sm:$0xff]   ;;  %v1511_v51 = vld [vmem:[%s2223_s5 + $0x194] ss:$28 sps:$4 sm:$0xff]   ;;  %v1531_v53 = vld [vmem:[%s2223_s5 + $0x26c] ss:$28 sps:$4 sm:$0xff]  }
  0x12   :  { %1302 = vmatmul.mubr.msk.bf16.vlgmr.msra.gmra.mrb[0].mxu0 %vm79_vm2, %v36_v18  ;;  %958 = vmatprep.subr.bf16.mxu1 %v1489_v24  ;;  %v1503_v50 = vld [vmem:[%s2223_s5 + $0x158] ss:$28 sps:$4 sm:$0xff]   ;;  %v1509_v54 = vld [vmem:[%s2223_s5 + $0x190] ss:$28 sps:$4 sm:$0xff]   ;;  %v1536_v56 = vld [vmem:[%s2223_s5 + $0x268] ss:$28 sps:$4 sm:$0xff]  }
  0x13   :  { %151 = vmatpush1.bf16.msra.mxu0 %v145_v19  ;;  %182 = vmatprep.mubr.bf16.mxu0 %v1691_v2  ;;  %v1517_v55 = vld [vmem:[%s2223_s5 + $0x1cc] ss:$28 sps:$4 sm:$0xff]   ;;  %v1523_v58 = vld [vmem:[%s2223_s5 + $0x204] ss:$28 sps:$4 sm:$0xff]   ;;  %v1529_v60 = vld [vmem:[%s2223_s5 + $0x23c] ss:$28 sps:$4 sm:$0xff]  }
  0x14   :  { %991 = vmatprep.subr.bf16.mxu0 %v1469_v20  ;;  %v1515_v57 = vld [vmem:[%s2223_s5 + $0x1c8] ss:$28 sps:$4 sm:$0xff]   ;;  %v1521_v59 = vld [vmem:[%s2223_s5 + $0x200] ss:$28 sps:$4 sm:$0xff]   ;;  %v1527_v61 = vld [vmem:[%s2223_s5 + $0x238] ss:$28 sps:$4 sm:$0xff]  }
  0x15   :  { %959 = vmatpush1.bf16.msra.mxu1 %v1494_v28  ;;  %v1535_v62 = vld [vmem:[%s2223_s5 + $0x274] ss:$28 sps:$4 sm:$0xff]  }
  0x16   :  { %960 = vmatprep.subr.bf16.mxu1 %v1495_v29 }
  0x19   :  { %961 = vmatpush1.bf16.msra.mxu1 %v1500_v32 }
  0x1a   :  { %1306 = vmatmul.mubr.msk.bf16.vlgmr.msra.gmra.mrb[4].mxu0 %vm139_vm3, %v33_v25  ;;  %962 = vmatprep.subr.bf16.mxu1 %v1501_v33 }
  0x1b   :  { %992 = vmatpush1.bf16.msra.mxu0 %v1467_v26 }
  0x1c   :  { %993 = vmatprep.subr.bf16.mxu0 %v1475_v27 }
  0x1d   :  { %963 = vmatpush1.bf16.msra.mxu1 %v1506_v36 }
  0x1e   :  { %964 = vmatprep.subr.bf16.mxu1 %v1507_v37 }
  0x1f   :  { %994 = vmatpush1.bf16.msra.mxu0 %v1473_v30 }
  0x20   :  { %995 = vmatprep.subr.bf16.mxu0 %v1481_v31 }
  0x21   :  { %965 = vmatpush1.bf16.msra.mxu1 %v1512_v40 }
  0x22   :  { %966 = vmatprep.subr.bf16.mxu1 %v1513_v42 }
  0x23   :  { %996 = vmatpush1.bf16.msra.mxu0 %v1479_v34 }
  0x24   :  { %997 = vmatprep.subr.bf16.mxu0 %v1487_v35 }
  0x25   :  { %967 = vmatpush1.bf16.msra.mxu1 %v1518_v44 }
  0x26   :  { %968 = vmatprep.subr.bf16.mxu1 %v1519_v45 }
  0x27   :  { %998 = vmatpush1.bf16.msra.mxu0 %v1485_v38 }
  0x28   :  { %999 = vmatprep.subr.bf16.mxu0 %v1493_v39 }
  0x29   :  { %969 = vmatpush1.bf16.msra.mxu1 %v1524_v48 }
  0x2a   :  { %970 = vmatprep.subr.bf16.mxu1 %v1525_v49 }
  0x2b   :  { %1000 = vmatpush1.bf16.msra.mxu0 %v1491_v41 }
  0x2c   :  { %1001 = vmatprep.subr.bf16.mxu0 %v1499_v43 }
  0x2d   :  { %971 = vmatpush1.bf16.msra.mxu1 %v1530_v52 }
  0x2e   :  { %972 = vmatprep.subr.bf16.mxu1 %v1531_v53 }
  0x2f   :  { %1002 = vmatpush1.bf16.msra.mxu0 %v1497_v46 }
  0x30   :  { %1003 = vmatprep.subr.bf16.mxu0 %v1505_v47 }
  0x31   :  { %973 = vmatpush1.bf16.msra.mxu1 %v1536_v56 }
  0x33   :  { %1004 = vmatpush1.bf16.msra.mxu0 %v1503_v50 }
  0x34   :  { %1005 = vmatprep.subr.bf16.mxu0 %v1511_v51 }
  0x37   :  { %1006 = vmatpush1.bf16.msra.mxu0 %v1509_v54 }
  0x38   :  { %1007 = vmatprep.subr.bf16.mxu0 %v1517_v55 }
  0x3b   :  { %1008 = vmatpush1.bf16.msra.mxu0 %v1515_v57 }
  0x3c   :  { %1009 = vmatprep.subr.bf16.mxu0 %v1523_v58 }
  0x3f   :  { %1010 = vmatpush1.bf16.msra.mxu0 %v1521_v59 }
  0x40   :  { %1011 = vmatprep.subr.bf16.mxu0 %v1529_v60 }
  0x41   :  { %15 = vsyncpa [#allocation3], 0  ;;  %v1533_v63 = vld [vmem:[%s2223_s5 + $0x270] ss:$28 sps:$4 sm:$0xff]   ;;  %v1537_v0 = vld [vmem:[%s2223_s5 + $0x2a4] ss:$28 sps:$4 sm:$0xff]   ;;  %v193_v18 = vlaneseq }
  0x42   :  { %v1541_v1 = vld [vmem:[%s2223_s5 + $0x2ac] ss:$28 sps:$4 sm:$0xff]   ;;  %v1542_v3 = vld [vmem:[%s2223_s5 + $0x2a0] ss:$28 sps:$4 sm:$0xff]   ;;  %974 = vmatprep.subr.bf16.mxu1 %v1537_v0  ;;  %v1548_v7 = vld [vmem:[%s2223_s5 + $0x2d8] ss:$28 sps:$4 sm:$0xff]  }
  0x43   :  { %1012 = vmatpush1.bf16.msra.mxu0 %v1527_v61  ;;  %v1539_v2 = vld [vmem:[%s2223_s5 + $0x2a8] ss:$28 sps:$4 sm:$0xff]   ;;  %975 = vmatpush1.bf16.msra.mxu1 %v1542_v3  ;;  %v1543_v4 = vld [vmem:[%s2223_s5 + $0x2dc] ss:$28 sps:$4 sm:$0xff]   ;;  %v1549_v8 = vld [vmem:[%s2223_s5 + $0x314] ss:$28 sps:$4 sm:$0xff]  }
  0x44   :  { %1013 = vmatprep.subr.bf16.mxu0 %v1535_v62  ;;  %v1545_v5 = vld [vmem:[%s2223_s5 + $0x2e0] ss:$28 sps:$4 sm:$0xff]   ;;  %976 = vmatprep.subr.bf16.mxu1 %v1543_v4  ;;  %v1551_v9 = vld [vmem:[%s2223_s5 + $0x318] ss:$28 sps:$4 sm:$0xff]   ;;  %v1554_v11 = vld [vmem:[%s2223_s5 + $0x310] ss:$28 sps:$4 sm:$0xff]  }
  0x45   :  { %v1547_v6 = vld [vmem:[%s2223_s5 + $0x2e4] ss:$28 sps:$4 sm:$0xff]   ;;  %v1553_v10 = vld [vmem:[%s2223_s5 + $0x31c] ss:$28 sps:$4 sm:$0xff]   ;;  %v1555_v12 = vld [vmem:[%s2223_s5 + $0x34c] ss:$28 sps:$4 sm:$0xff]  }
  0x46   :  { %v1559_v13 = vld [vmem:[%s2223_s5 + $0x354] ss:$28 sps:$4 sm:$0xff]   ;;  %v1560_v15 = vld [vmem:[%s2223_s5 + $0x348] ss:$28 sps:$4 sm:$0xff]   ;;  %v1974_v19 = vshrl.u32 %v193_v18, 7  ;;  %vm1208_vm9 = vcmask 125952  }
  0x47   :  { %1014 = vmatpush1.bf16.msra.mxu0 %v1533_v63  ;;  %977 = vmatpush1.bf16.msra.mxu1 %v1548_v7  ;;  %v1557_v14 = vld [vmem:[%s2223_s5 + $0x350] ss:$28 sps:$4 sm:$0xff]   ;;  %v1564_v17 = vld [vmem:[%s2223_s5 + $0x1d8] ss:$28 sps:$4 sm:$0xff]   ;;  %v191_v25 = vld [vmem:[%s2222_s4] sm:$0x3] }
  0x48   :  { %1015 = vmatprep.subr.bf16.mxu0 %v1541_v1  ;;  %978 = vmatprep.subr.bf16.mxu1 %v1549_v8  ;;  %v1563_v16 = vld [vmem:[%s2223_s5 + $0x14] ss:$28 sps:$4 sm:$0xff]   ;;  %v195_v24 = vsub.s32 0, %v1974_v19  ;;  %v199_v26 = vsub.s32 1, %v1974_v19  ;;  %v1568_v43 = vld [vmem:[%s2223_s5 + $0x4c] ss:$28 sps:$4 sm:$0xff]  }
  0x49   :  { %v1561_v40 = vld [vmem:[%s2223_s5 + $0x10] ss:$28 sps:$4 sm:$0xff]   ;;  %v1565_v41 = vld [vmem:[%s2223_s5 + $0x18] ss:$28 sps:$4 sm:$0xff]   ;;  %v1566_v45 = vld [vmem:[%s2223_s5 + $0x48] ss:$28 sps:$4 sm:$0xff]  }
  0x4a   :  { %v196_v27 = vrot.slane %v191_v25, %v195_v24  ;;  %v200_v29 = vrot.slane %v191_v25, %v199_v26  ;;  %v1569_v44 = vld [vmem:[%s2223_s5 + $0x210] ss:$28 sps:$4 sm:$0xff]   ;;  %v1573_v47 = vld [vmem:[%s2223_s5 + $0x84] ss:$28 sps:$4 sm:$0xff]   ;;  %v1578_v51 = vld [vmem:[%s2223_s5 + $0xbc] ss:$28 sps:$4 sm:$0xff]  }
  0x4b   :  { %1016 = vmatpush1.bf16.msra.mxu0 %v1539_v2  ;;  %979 = vmatpush1.bf16.msra.mxu1 %v1554_v11  ;;  %v1570_v46 = vld [vmem:[%s2223_s5 + $0x50] ss:$28 sps:$4 sm:$0xff]   ;;  %v1574_v48 = vld [vmem:[%s2223_s5 + $0x248] ss:$28 sps:$4 sm:$0xff]   ;;  %v1571_v49 = vld [vmem:[%s2223_s5 + $0x80] ss:$28 sps:$4 sm:$0xff]  }
  0x4c   :  { %1017 = vmatprep.subr.bf16.mxu0 %v1547_v6  ;;  %980 = vmatprep.subr.bf16.mxu1 %v1555_v12  ;;  %v1575_v50 = vld [vmem:[%s2223_s5 + $0x88] ss:$28 sps:$4 sm:$0xff]   ;;  %v1579_v52 = vld [vmem:[%s2223_s5 + $0x280] ss:$28 sps:$4 sm:$0xff]   ;;  %v1576_v53 = vld [vmem:[%s2223_s5 + $0xb8] ss:$28 sps:$4 sm:$0xff]  }
  0x4d   :  { %v1580_v54 = vld [vmem:[%s2223_s5 + $0xc0] ss:$28 sps:$4 sm:$0xff]   ;;  %v1583_v55 = vld [vmem:[%s2223_s5 + $0xf4] ss:$28 sps:$4 sm:$0xff]   ;;  %v1588_v59 = vld [vmem:[%s2223_s5 + $0x12c] ss:$28 sps:$4 sm:$0xff]  }
  0x4e   :  { %v1584_v56 = vld [vmem:[%s2223_s5 + $0x2b8] ss:$28 sps:$4 sm:$0xff]   ;;  %v1581_v57 = vld [vmem:[%s2223_s5 + $0xf0] ss:$28 sps:$4 sm:$0xff]   ;;  %v1586_v61 = vld [vmem:[%s2223_s5 + $0x128] ss:$28 sps:$4 sm:$0xff]  }
  0x4f   :  { %1018 = vmatpush1.bf16.msra.mxu0 %v1545_v5  ;;  %981 = vmatpush1.bf16.msra.mxu1 %v1560_v15  ;;  %v1585_v58 = vld [vmem:[%s2223_s5 + $0xf8] ss:$28 sps:$4 sm:$0xff]   ;;  %v1589_v60 = vld [vmem:[%s2223_s5 + $0x2f0] ss:$28 sps:$4 sm:$0xff]   ;;  %v1593_v63 = vld [vmem:[%s2223_s5 + $0x164] ss:$28 sps:$4 sm:$0xff]  }
  0x50   :  { %1019 = vmatprep.subr.bf16.mxu0 %v1553_v10  ;;  %1032 = vmatprep.subr.bf16.mxu1 %v1563_v16  ;;  %v1590_v62 = vld [vmem:[%s2223_s5 + $0x130] ss:$28 sps:$4 sm:$0xff]   ;;  %v1594_v0 = vld [vmem:[%s2223_s5 + $0x328] ss:$28 sps:$4 sm:$0xff]   ;;  %v1591_v1 = vld [vmem:[%s2223_s5 + $0x160] ss:$28 sps:$4 sm:$0xff]  }
  0x51   :  { %v1595_v2 = vld [vmem:[%s2223_s5 + $0x168] ss:$28 sps:$4 sm:$0xff]   ;;  %v1598_v3 = vld [vmem:[%s2223_s5 + $0x19c] ss:$28 sps:$4 sm:$0xff]   ;;  %v1603_v7 = vld [vmem:[%s2223_s5 + $0x1d4] ss:$28 sps:$4 sm:$0xff]  }
  0x52   :  { %v1599_v4 = vld [vmem:[%s2223_s5 + $0x360] ss:$28 sps:$4 sm:$0xff]   ;;  %v1596_v5 = vld [vmem:[%s2223_s5 + $0x198] ss:$28 sps:$4 sm:$0xff]   ;;  %v1601_v8 = vld [vmem:[%s2223_s5 + $0x1d0] ss:$28 sps:$4 sm:$0xff]  }
  0x53   :  { %1020 = vmatpush1.bf16.msra.mxu0 %v1551_v9  ;;  %v1600_v6 = vld [vmem:[%s2223_s5 + $0x1a0] ss:$28 sps:$4 sm:$0xff]   ;;  %v1606_v9 = vld [vmem:[%s2223_s5 + $0x20c] ss:$28 sps:$4 sm:$0xff]   ;;  %v1615_v15 = vld [vmem:[%s2223_s5 + $0x2b4] ss:$28 sps:$4 sm:$0xff]  }
  0x54   :  { %1021 = vmatprep.subr.bf16.mxu0 %v1559_v13  ;;  %v1604_v10 = vld [vmem:[%s2223_s5 + $0x208] ss:$28 sps:$4 sm:$0xff]   ;;  %v1607_v12 = vld [vmem:[%s2223_s5 + $0x240] ss:$28 sps:$4 sm:$0xff]   ;;  %v1613_v16 = vld [vmem:[%s2223_s5 + $0x2b0] ss:$28 sps:$4 sm:$0xff]  }
  0x55   :  { %v1609_v11 = vld [vmem:[%s2223_s5 + $0x244] ss:$28 sps:$4 sm:$0xff]   ;;  %v1612_v13 = vld [vmem:[%s2223_s5 + $0x27c] ss:$28 sps:$4 sm:$0xff]   ;;  %v349_v25 = vsub.s32 2, %v1974_v19  ;;  %vm1268_vm12 = vcmask 130048  }
  0x56   :  { %v1616_v18 = vld [vmem:[%s2223_s5 + $0x2e8] ss:$28 sps:$4 sm:$0xff]  }
  0x57   :  { %1022 = vmatpush1.bf16.msra.mxu0 %v1557_v14  ;;  %v1610_v14 = vld [vmem:[%s2223_s5 + $0x278] ss:$28 sps:$4 sm:$0xff]  }
  0x58   :  { %1427 = vmatprep.subr.bf16.mxu0 %v1564_v17  ;;  %v1618_v17 = vld [vmem:[%s2223_s5 + $0x2ec] ss:$28 sps:$4 sm:$0xff]  }
  0xe5   :  { %v124_v20 = vpop.f32.mrb[0].mxu0 }
  0xe6   :  { %v126_v21 = vpop.f32.mrb[1].mxu0 }
  0xe7   :  { %v128_v22 = vpop.f32.mrb[2].mxu0 }
  0xe8   :  { %v129_v23 = vpop.f32.mrb[3].mxu0  ;;  %v1624_v22 = vld [vmem:[%s2223_s5 + $0x35c] ss:$28 sps:$4 sm:$0xff]  }
  0xe9   :  { %v1622_v23 = vld [vmem:[%s2223_s5 + $0x358] ss:$28 sps:$4 sm:$0xff]  }
  0xed   :  { %v184_v28 = vpop.f32.mrb[4].mxu0 }
  0xee   :  { %v185_v30 = vadd.f32 %v184_v28, %v124_v20  ;;  %v186_v31 = vpop.f32.mrb[5].mxu0  ;;  %v1621_v20 = vld [vmem:[%s2223_s5 + $0x324] ss:$28 sps:$4 sm:$0xff]   ;;  %v353_v28 = vsub.s32 3, %v1974_v19 }
  0xef   :  { %v187_v32 = vadd.f32 %v186_v31, %v126_v21  ;;  %v188_v33 = vpop.f32.mrb[6].mxu0  ;;  %v1619_v21 = vld [vmem:[%s2223_s5 + $0x320] ss:$28 sps:$4 sm:$0xff]  }
  0xf0   :  { %v203_v34 = vadd.f32 %v196_v27, %v185_v30  ;;  %v189_v35 = vpop.f32.mrb[7].mxu0  ;;  %v2133_v27 = vld [vmem:[%s2224_s6] sm:$0x7f] }
  0xf1   :  { %v204_v36 = vadd.f32 %v200_v29, %v187_v32  ;;  %v342_v29 = vrot.slane %v2133_v27, %v195_v24  ;;  %v350_v30 = vrot.slane %v2133_v27, %v349_v25  ;;  %v346_v31 = vrot.slane %v2133_v27, %v199_v26 }
  0xf2   :  { %v205_v37 = vmax.f32 %v203_v34, 0.0  ;;  %v354_v32 = vrot.slane %v2133_v27, %v353_v28 }
  0xf3   :  { %v206_v38 = vmax.f32 %v204_v36, 0.0 }
  0xf4   :  { %v1991_v42 = vpack.c.bf16 %v205_v37, %v205_v37 }
  0xf5   :  { %v208_v39 = vpack.c.bf16 %v206_v38, %v206_v38 }
  0xf7   :  { %982 = vmatprep.mubr.bf16.mxu1 %v208_v39  ;;  %1023 = vmatprep.mubr.bf16.mxu0 %v208_v39 }
  0xf8   :  { %983 = vmatmul.mubr.bf16.vlgmr.msra.gmra.mrb[0].mxu1 %v1991_v42  ;;  %1024 = vmatmul.mubr.bf16.vlgmr.msra.gmra.mrb[8].mxu0 %v1991_v42 }
  0xf9   :  { %1033 = vmatpush1.bf16.msra.mxu1 %v1561_v40  ;;  %1428 = vmatpush3.bf16.msra.mxu0 %v1565_v41 }
  0xfa   :  { %1064 = vmatprep.mubr.bf16.mxu1 %v208_v39  ;;  %1105 = vmatprep.mubr.bf16.mxu0 %v208_v39 }
  0xfb   :  { %1034 = vmatprep.subr.bf16.mxu1 %v1568_v43  ;;  %1429 = vmatprep.subr.bf16.mxu0 %v1569_v44 }
  0xfd   :  { %1035 = vmatpush1.bf16.msra.mxu1 %v1566_v45  ;;  %1430 = vmatpush3.bf16.msra.mxu0 %v1570_v46 }
  0xfe   :  { %1036 = vmatprep.subr.bf16.mxu1 %v1573_v47  ;;  %1431 = vmatprep.subr.bf16.mxu0 %v1574_v48 }
 0x101   :  { %1037 = vmatpush1.bf16.msra.mxu1 %v1571_v49  ;;  %1432 = vmatpush3.bf16.msra.mxu0 %v1575_v50 }
 0x102   :  { %1038 = vmatprep.subr.bf16.mxu1 %v1578_v51  ;;  %1433 = vmatprep.subr.bf16.mxu0 %v1579_v52 }
 0x105   :  { %1039 = vmatpush1.bf16.msra.mxu1 %v1576_v53  ;;  %1434 = vmatpush3.bf16.msra.mxu0 %v1580_v54 }
 0x106   :  { %1040 = vmatprep.subr.bf16.mxu1 %v1583_v55  ;;  %1435 = vmatprep.subr.bf16.mxu0 %v1584_v56 }
 0x109   :  { %1041 = vmatpush1.bf16.msra.mxu1 %v1581_v57  ;;  %1436 = vmatpush3.bf16.msra.mxu0 %v1585_v58 }
 0x10a   :  { %1042 = vmatprep.subr.bf16.mxu1 %v1588_v59  ;;  %1437 = vmatprep.subr.bf16.mxu0 %v1589_v60 }
 0x10d   :  { %1043 = vmatpush1.bf16.msra.mxu1 %v1586_v61  ;;  %1438 = vmatpush3.bf16.msra.mxu0 %v1590_v62 }
 0x10e   :  { %1044 = vmatprep.subr.bf16.mxu1 %v1593_v63  ;;  %1439 = vmatprep.subr.bf16.mxu0 %v1594_v0  ;;  %v1210_v63 = vld [vmem:[%s2225_s7] sm:$0xff]  ;;  %v1211_v0 = vld [vmem:[%s2225_s7 + $0x8] sm:$0xff] }
 0x111   :  { %1045 = vmatpush1.bf16.msra.mxu1 %v1591_v1  ;;  %1440 = vmatpush3.bf16.msra.mxu0 %v1595_v2  ;;  %v365_v1 = vsub.s32 6, %v1974_v19  ;;  %v1214_v2 = vunpack.c.l.bf16 %v1210_v63 }
 0x112   :  { %1046 = vmatprep.subr.bf16.mxu1 %v1598_v3  ;;  %1441 = vmatprep.subr.bf16.mxu0 %v1599_v4  ;;  %v1216_v3 = vunpack.c.l.bf16 %v1211_v0 }
 0x115   :  { %1047 = vmatpush1.bf16.msra.mxu1 %v1596_v5  ;;  %1442 = vmatpush3.bf16.msra.mxu0 %v1600_v6  ;;  %v366_v6 = vrot.slane %v2133_v27, %v365_v1 }
 0x116   :  { %1048 = vmatprep.subr.bf16.mxu1 %v1603_v7 }
 0x118   :  { %1106 = vmatmul.mubr.bf16.vlgmr.msra.gmra.mrb[12].mxu0 %v1991_v42 }
 0x119   :  { %1049 = vmatpush1.bf16.msra.mxu1 %v1601_v8 }
 0x11a   :  { %1050 = vmatprep.subr.bf16.mxu1 %v1606_v9  ;;  %v1215_v9 = vunpack.c.h.bf16 %v1210_v63 }
 0x11d   :  { %1051 = vmatpush1.bf16.msra.mxu1 %v1604_v10  ;;  %v1217_v10 = vunpack.c.h.bf16 %v1211_v0 }
 0x11e   :  { %1052 = vmatprep.subr.bf16.mxu1 %v1609_v11 }
 0x121   :  { %1053 = vmatpush1.bf16.msra.mxu1 %v1607_v12 }
 0x122   :  { %1054 = vmatprep.subr.bf16.mxu1 %v1612_v13 }
 0x125   :  { %1055 = vmatpush1.bf16.msra.mxu1 %v1610_v14 }
 0x126   :  { %1056 = vmatprep.subr.bf16.mxu1 %v1615_v15 }
 0x129   :  { %1057 = vmatpush1.bf16.msra.mxu1 %v1613_v16 }
 0x12a   :  { %1058 = vmatprep.subr.bf16.mxu1 %v1618_v17 }
 0x12d   :  { %1059 = vmatpush1.bf16.msra.mxu1 %v1616_v18 }
 0x12e   :  { %1060 = vmatprep.subr.bf16.mxu1 %v1621_v20 }
 0x131   :  { %1061 = vmatpush1.bf16.msra.mxu1 %v1619_v21 }
 0x132   :  { %1062 = vmatprep.subr.bf16.mxu1 %v1624_v22 }
 0x135   :  { %1063 = vmatpush1.bf16.msra.mxu1 %v1622_v23 }
 0x138   :  { %1065 = vmatmul.mubr.bf16.vlgmr.msra.gmra.mrb[4].mxu1 %v1991_v42 }
 0x1cb   :  { %v984_v33 = vpop.f32.mrb[0].mxu1  ;;  %v1025_v34 = vpop.f32.mrb[8].mxu0 }
 0x1cc   :  { %v2144_v35 = vadd.f32 %v984_v33, %v342_v29  ;;  %v2146_v36 = vadd.f32 %v1025_v34, %v350_v30  ;;  %v986_v37 = vpop.f32.mrb[1].mxu1  ;;  %v1027_v38 = vpop.f32.mrb[9].mxu0 }
 0x1cd   :  { %v2148_v39 = vadd.f32 %v986_v37, %v346_v31  ;;  %v2150_v40 = vadd.f32 %v1027_v38, %v354_v32  ;;  %v988_v24 = vpop.f32.mrb[2].mxu1  ;;  %v1029_v41 = vpop.f32.mrb[10].mxu0 }
 0x1ce   :  { %v1113_v42 = vand.u32 2147483647, %v2144_v35  ;;  %v989_v43 = vpop.f32.mrb[3].mxu1  ;;  %v1030_v26 = vpop.f32.mrb[11].mxu0  ;;  %v1115_v44 = vand.u32 2147483647, %v2146_v36  ;;  %v1249_v14 = vmul.f32 %v1214_v2, %v2144_v35  ;;  %v1251_v20 = vmul.f32 %v1216_v3, %v2146_v36 }
 0x1cf   :  { %v1114_v46 = vand.u32 2147483647, %v2148_v39  ;;  %v1116_v48 = vand.u32 2147483647, %v2150_v40  ;;  %vm1155_vm4 = vcmp.ge.f32.partialorder %v2144_v35, 0.0  ;;  %v1221_v8 = vmax.f32 %v2144_v35, 0.0 }
 0x1d0   :  { %v1120_v45 = vsub.f32 0.0, %v1113_v42  ;;  %v1122_v47 = vsub.f32 0.0, %v1115_v44  ;;  %vm1157_vm5 = vcmp.ge.f32.partialorder %v2146_v36, 0.0  ;;  %v1223_v18 = vmax.f32 %v2146_v36, 0.0  ;;  %v1213_v2 = vld [vmem:[%s2225_s7 + $0x18] sm:$0xf] }
 0x1d1   :  { %v1121_v50 = vsub.f32 0.0, %v1114_v46  ;;  %v1123_v52 = vsub.f32 0.0, %v1116_v48  ;;  %vm1156_vm6 = vcmp.ge.f32.partialorder %v2148_v39, 0.0  ;;  %v1222_v32 = vmax.f32 %v2148_v39, 0.0 }
 0x1d2   :  { %v1127_v49 = vmul.f32 1.442695, %v1120_v45  ;;  %v1131_v51 = vmul.f32 1.442695, %v1122_v47  ;;  %v1250_v33 = vmul.f32 %v1215_v9, %v2148_v39  ;;  %vm1158_vm7 = vcmp.ge.f32.partialorder %v2150_v40, 0.0 }
 0x1d3   :  { %v1129_v53 = vmul.f32 1.442695, %v1121_v50  ;;  %v1133_v54 = vmul.f32 1.442695, %v1123_v52  ;;  %v1224_v26 = vmax.f32 %v2150_v40, 0.0  ;;  %v357_v39 = vsub.s32 4, %v1974_v19 }
 0x1d4   :  { %1625 = vpow2.f32 %v1127_v49 }
 0x1d5   :  { %1627 = vpow2.f32 %v1131_v51  ;;  %v1252_v51 = vmul.f32 %v1217_v10, %v2150_v40  ;;  %v361_v40 = vsub.s32 5, %v1974_v19  ;;  %v358_v63 = vrot.slane %v2133_v27, %v357_v39 }
 0x1d6   :  { %1629 = vpow2.f32 %v1129_v53  ;;  %v1220_v10 = vunpack.c.l.bf16 %v1213_v2 }
 0x1d7   :  { %1631 = vpow2.f32 %v1133_v54  ;;  %v362_v0 = vrot.slane %v2133_v27, %v361_v40 }
 0x1de   :  { %v1626_v55 = vpop.eup %1625 }
 0x1df   :  { %v1628_v56 = vpop.eup %1627  ;;  %v1141_v57 = vadd.f32 1.0, %v1626_v55 }
 0x1e0   :  { %v1630_v58 = vpop.eup %1629  ;;  %v1143_v59 = vadd.f32 1.0, %v1628_v56 }
 0x1e1   :  { %v1632_v60 = vpop.eup %1631  ;;  %1633 = vrcp.f32 %v1141_v57  ;;  %v1142_v61 = vadd.f32 1.0, %v1630_v58 }
 0x1e2   :  { %1635 = vlog2.f32 %v1141_v57  ;;  %v1144_v62 = vadd.f32 1.0, %v1632_v60 }
 0x1e3   :  { %1637 = vrcp.f32 %v1143_v59 }
 0x1e4   :  { %1639 = vlog2.f32 %v1143_v59 }
 0x1e5   :  { %1641 = vrcp.f32 %v1142_v61 }
 0x1e6   :  { %1643 = vlog2.f32 %v1142_v61 }
 0x1e7   :  { %1645 = vrcp.f32 %v1144_v62 }
 0x1e8   :  { %1647 = vlog2.f32 %v1144_v62 }
 0x1eb   :  { %v1634_v4 = vpop.eup %1633  ;;  %v1443_v5 = vpop.f32.mrb[12].mxu0 }
 0x1ec   :  { %v1636_v7 = vpop.eup %1635  ;;  %v1444_v11 = vpop.f32.mrb[13].mxu0  ;;  %v1162_v22 = vmul.f32 %v1634_v4, %v1626_v55 }
 0x1ed   :  { %v1638_v12 = vpop.eup %1637  ;;  %v1229_v13 = vmul.f32 0.6931472, %v1636_v7  ;;  %v1445_v15 = vadd.f32 %v1444_v11, %v1443_v5  ;;  %v1446_v16 = vpop.f32.mrb[14].mxu0 }
 0x1ee   :  { %v1640_v17 = vpop.eup %1639  ;;  %v1447_v21 = vpop.f32.mrb[15].mxu0  ;;  %v1164_v23 = vmul.f32 %v1638_v12, %v1628_v56  ;;  %v1169_v45 = vsel %vm1155_vm4, %v1634_v4, %v1162_v22 }
 0x1ef   :  { %v1642_v25 = vpop.eup %1641  ;;  %v1242_v28 = vadd.f32 %v1229_v13, %v1221_v8  ;;  %v1233_v29 = vmul.f32 0.6931472, %v1640_v17  ;;  %v2171_v30 = vadd.f32 %v1445_v15, %v366_v6 }
 0x1f0   :  { %v1644_v31 = vpop.eup %1643  ;;  %v1163_v34 = vmul.f32 %v1642_v25, %v1630_v58  ;;  %v1171_v46 = vsel %vm1157_vm5, %v1638_v12, %v1164_v23 }
 0x1f1   :  { %v1646_v37 = vpop.eup %1645  ;;  %v1256_v38 = vsub.f32 %v1242_v28, %v1249_v14  ;;  %v1244_v24 = vadd.f32 %v1233_v29, %v1223_v18  ;;  %v1231_v41 = vmul.f32 0.6931472, %v1644_v31  ;;  %v1119_v42 = vand.u32 2147483647, %v2171_v30 }
 0x1f2   :  { %v1648_v43 = vpop.eup %1647  ;;  %v1165_v44 = vmul.f32 %v1646_v37, %v1632_v60  ;;  %v1170_v52 = vsel %vm1156_vm6, %v1642_v25, %v1163_v34  ;;  %v1227_v13 = vmax.f32 %v2171_v30, 0.0  ;;  %vm1161_vm8 = vcmp.ge.f32.partialorder %v2171_v30, 0.0 }
 0x1f3   :  { %v1243_v47 = vadd.f32 %v1231_v41, %v1222_v32  ;;  %v1126_v48 = vsub.f32 0.0, %v1119_v42  ;;  %v1235_v49 = vmul.f32 0.6931472, %v1648_v43  ;;  %v1258_v50 = vsub.f32 %v1244_v24, %v1251_v20  ;;  %v1212_v32 = vld [vmem:[%s2225_s7 + $0x10] sm:$0xff]  ;;  %s1692_s7 = smov [#allocation2]  }
 0x1f4   :  { %v1172_v53 = vsel %vm1158_vm7, %v1646_v37, %v1165_v44  ;;  %v1423_v35 = vpack.c.bf16 %v1170_v52, %v1169_v45  ;;  %v1255_v18 = vmul.f32 %v1220_v10, %v2171_v30  ;;  %v1218_v34 = vunpack.c.l.bf16 %v1212_v32  ;;  %s1281_s14 = sshll.u32 %s1692_s7, 4  ;;  %s1282_s14 = int_to_ptr.vmem [resolvable:$true] %s1281_s14 }
 0x1f5   :  { %v1257_v54 = vsub.f32 %v1243_v47, %v1250_v33  ;;  %v1139_v55 = vmul.f32 1.442695, %v1126_v48  ;;  %v1245_v56 = vadd.f32 %v1235_v49, %v1224_v26  ;;  %v1424_v57 = vpack.c.bf16 %v1172_v53, %v1171_v46  ;;  %s1667_s15 = scalar_lea.vmem %s1282_s14, 448  ;;  %p1672_p1 = scmp.lt.s32.totalorder %s1282_s14, %s1282_s14 }
 0x1f6   :  { %1205 = vst [vmem:[#allocation2] sm:$0xff] %v1423_v35  ;;  %v1219_v24 = vunpack.c.h.bf16 %v1212_v32  ;;  %p1668_p0 = scmp.ne.s32.totalorder %s1282_s14, %s1667_s15  ;;  %p1673_p2 = scmp.lt.s32.totalorder %s1667_s15, %s1667_s15 }
 0x1f7   :  { %1649 = vpow2.f32 %v1139_v55  ;;  %v1259_v36 = vsub.f32 %v1245_v56, %v1252_v51  ;;  %v1263_v58 = vadd.f32 %v1257_v54, %v1256_v38  ;;  %1206 = vst [vmem:[#allocation2 + $0x8] sm:$0xff] %v1424_v57 }
 0x1f8   :  { %p1674_p3 = por %p1673_p2, %p1672_p1 }
 0x1f9   :  { %v1264_v59 = vadd.f32 %v1263_v58, %v1258_v50 }
 0x1fa   :  { %p1675_p4 = pnand %p1674_p3, %p1668_p0 }
 0x1fb   :  { %v2187_v60 = vadd.f32 %v1264_v59, %v1259_v36 }
 0x201   :  { %v1650_v61 = vpop.eup %1649 }
 0x202   :  { %v1147_v62 = vadd.f32 1.0, %v1650_v61 }
 0x204   :  { %1651 = vrcp.f32 %v1147_v62 }
 0x205   :  { %1653 = vlog2.f32 %v1147_v62 }
 0x20b   :  { %v1066_v1 = vpop.f32.mrb[4].mxu1 }
 0x20c   :  { %v1067_v3 = vadd.f32 %v1066_v1, %v358_v63  ;;  %v1068_v4 = vpop.f32.mrb[5].mxu1 }
 0x20d   :  { %v1069_v5 = vadd.f32 %v1068_v4, %v362_v0  ;;  %v1070_v6 = vpop.f32.mrb[6].mxu1 }
 0x20e   :  { %v1652_v7 = vpop.eup %1651  ;;  %v1117_v8 = vand.u32 2147483647, %v1067_v3  ;;  %v1071_v9 = vpop.f32.mrb[7].mxu1  ;;  %vm1159_vm10 = vcmp.ge.f32.partialorder %v1067_v3, 0.0  ;;  %v1225_v43 = vmax.f32 %v1067_v3, 0.0  ;;  %v1253_v49 = vmul.f32 %v1218_v34, %v1067_v3 }
 0x20f   :  { %v1654_v11 = vpop.eup %1653  ;;  %v1118_v19 = vand.u32 2147483647, %v1069_v5  ;;  %v1168_v27 = vmul.f32 %v1652_v7, %v1650_v61  ;;  %vm1160_vm11 = vcmp.ge.f32.partialorder %v1069_v5, 0.0  ;;  %v1226_v45 = vmax.f32 %v1069_v5, 0.0 }
 0x210   :  { %v1124_v12 = vsub.f32 0.0, %v1117_v8  ;;  %v1241_v14 = vmul.f32 0.6931472, %v1654_v11  ;;  %v1254_v52 = vmul.f32 %v1219_v24, %v1069_v5 }
 0x211   :  { %v1125_v15 = vsub.f32 0.0, %v1118_v19  ;;  %v1175_v20 = vsel %vm1161_vm8, %v1652_v7, %v1168_v27 }
 0x212   :  { %v1135_v16 = vmul.f32 1.442695, %v1124_v12  ;;  %v1248_v17 = vadd.f32 %v1241_v14, %v1227_v13  ;;  %v1426_v22 = vpack.c.bf16 %v1175_v20, %v1175_v20 }
 0x213   :  { %v1137_v21 = vmul.f32 1.442695, %v1125_v15 }
 0x214   :  { %1655 = vpow2.f32 %v1135_v16  ;;  %v1262_v23 = vsub.f32 %v1248_v17, %v1255_v18  ;;  %1209 = vst.msk [vmem:[#allocation2 + $0x18] sm:$0xf] %vm1208_vm9, %v1426_v22 }
 0x215   :  { %1657 = vpow2.f32 %v1137_v21 }
 0x216   :  { %v1269_v35 = vsel %vm1268_vm12, %v1262_v23, 0.0 }
 0x21e   :  { %v1656_v25 = vpop.eup %1655 }
 0x21f   :  { %v1658_v28 = vpop.eup %1657  ;;  %v1145_v29 = vadd.f32 1.0, %v1656_v25 }
 0x220   :  { %v1146_v31 = vadd.f32 1.0, %v1658_v28 }
 0x221   :  { %1659 = vrcp.f32 %v1145_v29 }
 0x222   :  { %1661 = vrcp.f32 %v1146_v31 }
 0x223   :  { %1663 = vlog2.f32 %v1145_v29 }
 0x224   :  { %1665 = vlog2.f32 %v1146_v31 }
 0x22b   :  { %v1660_v30 = vpop.eup %1659 }
 0x22c   :  { %v1662_v33 = vpop.eup %1661  ;;  %v1166_v37 = vmul.f32 %v1660_v30, %v1656_v25 }
 0x22d   :  { %v1664_v38 = vpop.eup %1663  ;;  %v1167_v41 = vmul.f32 %v1662_v33, %v1658_v28 }
 0x22e   :  { %v1666_v42 = vpop.eup %1665  ;;  %v1237_v26 = vmul.f32 0.6931472, %v1664_v38  ;;  %v1173_v44 = vsel %vm1159_vm10, %v1660_v30, %v1166_v37 }
 0x22f   :  { %v1239_v46 = vmul.f32 0.6931472, %v1666_v42  ;;  %v1174_v47 = vsel %vm1160_vm11, %v1662_v33, %v1167_v41 }
 0x230   :  { %v1246_v48 = vadd.f32 %v1237_v26, %v1225_v43  ;;  %v1425_v50 = vpack.c.bf16 %v1174_v47, %v1173_v44 }
 0x231   :  { %v1247_v51 = vadd.f32 %v1239_v46, %v1226_v45 }
 0x232   :  { %v1260_v53 = vsub.f32 %v1246_v48, %v1253_v49  ;;  %1207 = vst [vmem:[#allocation2 + $0x10] sm:$0xff] %v1425_v50 }
 0x233   :  { %v1261_v54 = vsub.f32 %v1247_v51, %v1254_v52 }
 0x234   :  { %v1266_v55 = vadd.f32 %v2187_v60, %v1260_v53 }
 0x236   :  { %v1267_v56 = vadd.f32 %v1266_v55, %v1261_v54 }
 0x238   :  { %v1270_v57 = vadd.f32 %v1269_v35, %v1267_v56 }
 0x23a   :  { %1271 = vadd.xlane.f32.xlu0 %v1270_v57 }
 0x23b   :  { %1678 = shalt.err (!%p1675_p4)
}
 0x23c   :  { %s1679_s4 = scalar_lea.hbm %s2226_s8, 448 }
 0x23d   :  { %p1680_p5 = scmp.ne.s32.totalorder %s2226_s8, %s1679_s4  ;;  %p1683_p6 = scmp.lt.u32.totalorder %s1679_s4, %s2226_s8 }
 0x23f   :  { %p1685_p7 = pnand %p1683_p6, %p1680_p5 }
 0x241   :  { %1688 = shalt.err (!%p1685_p7)
}
 0x242   :  { %1284 = dma.vmem_to_hbm [thread:$0]  %s1282_s14, 448, %s2226_s8, [#allocation3]   ;;  %vm1273_vm13 = vcmask 7168  }
 0x2c7   :  { %v1272_v36 = vpop.xlane.xlu0 %1271 }
 0x2c8   :  { %1274 = vst.msk [vmem:[%s2227_s9] sm:$0xff] %vm1273_vm13, %v1272_v36 }
 0x2c9   :  { %1689 = dma.done.wait [#allocation3], 448  }
 0x2ca   :  { %1690 = vsyncadd [#allocation3], 4294966848 }
 0x2cb   :  { %1292 = vsyncpa [#allocation3], 1 }

</bundles_post_ra>
